<compile_context>
chip_gen: v7x
topology: tpu7x:2x2x1
jax: 0.10.0
libtpu: 0.0.40
codegen_flags: <defaults>
</compile_context>

<pallas_src>
import functools

import jax
import jax.numpy as jnp
from jax.experimental import pallas as pl
from jax.experimental.pallas import tpu as pltpu

_A_SCALE = 127.0        # int8 quantization scale for A_hat (values in [0, 1])
_LANE = 128
_ALIGN = 256            # row/col alignment (int8 tile-safe, lane multiple)
_V_RESIDENT_BYTES = 4 * 1024 * 1024


# ----------------------------------------------------------------------------
# Pallas kernel: one GCN layer,  out = act((A_hat @ V) @ W + b)
# tiled over rows (i, parallel) and the contraction axis (k, arbitrary).
# ----------------------------------------------------------------------------
def _gcn_layer_kernel(a_ref, v_ref, w_ref, b_ref, o_ref, acc_ref,
                      *, relu, tk, v_resident):
    k = pl.program_id(1)

    @pl.when(k == 0)
    def _():
        acc_ref[...] = jnp.zeros_like(acc_ref)

    # A tile: int8 in HBM/VMEM (halved bandwidth), exact bf16 convert for the MXU.
    a = a_ref[...].astype(jnp.bfloat16)
    if v_resident:
        start = pl.multiple_of(k * tk, tk)
        v = v_ref[pl.ds(start, tk), :]          # V resident: slice the k-th chunk
    else:
        v = v_ref[...]                          # V streamed per (i, k)
    acc_ref[...] += jnp.dot(a, v, preferred_element_type=jnp.float32)

    @pl.when(k == pl.num_programs(1) - 1)
    def _():
        # Small (TM, c_in) @ (c_in, c_out) bf16 matmul + f32 bias + activation,
        # only on the finalize step. The int8 dequant scale is folded into W.
        y = jnp.dot(acc_ref[...].astype(jnp.bfloat16), w_ref[...],
                    preferred_element_type=jnp.float32) + b_ref[...]
        if relu:
            y = jnp.maximum(y, 0.0)
        o_ref[...] = y.astype(o_ref.dtype)


def _gcn_layer(a_q, v_p, w_p, b_p, *, relu, out_dtype, tm, tk, v_resident):
    n_pad = a_q.shape[0]
    c_in = v_p.shape[1]
    c_out = w_p.shape[1]
    assert n_pad % tm == 0 and n_pad % tk == 0

    if v_resident:
        v_spec = pl.BlockSpec((n_pad, c_in), lambda i, k: (0, 0))   # resident in VMEM
    else:
        v_spec = pl.BlockSpec((tk, c_in), lambda i, k: (k, 0))      # streamed per k

    kernel = functools.partial(_gcn_layer_kernel, relu=relu, tk=tk,
                               v_resident=v_resident)

    return pl.pallas_call(
        kernel,
        out_shape=jax.ShapeDtypeStruct((n_pad, c_out), out_dtype),
        grid_spec=pltpu.PrefetchScalarGridSpec(
            num_scalar_prefetch=0,
            grid=(n_pad // tm, n_pad // tk),
            in_specs=[
                pl.BlockSpec((tm, tk), lambda i, k: (i, k)),        # A_hat int8 tile
                v_spec,                                             # V (X or H), bf16
                pl.BlockSpec((c_in, c_out), lambda i, k: (0, 0)),   # W bf16 (resident)
                pl.BlockSpec((1, c_out), lambda i, k: (0, 0)),      # bias f32 (resident)
            ],
            out_specs=pl.BlockSpec((tm, c_out), lambda i, k: (i, 0)),
            scratch_shapes=[pltpu.VMEM((tm, c_in), jnp.float32)],
        ),
        compiler_params=pltpu.CompilerParams(
            dimension_semantics=("parallel", "arbitrary"),
            vmem_limit_bytes=48 * 1024 * 1024,
        ),
    )(a_q, v_p, w_p, b_p)


# ----------------------------------------------------------------------------
# Tiling / padding helpers
# ----------------------------------------------------------------------------
def _round_up(x, m):
    return -(-x // m) * m


def _choose_tiles(n, tm_max=1024, tk_max=2048):
    n_pad = _round_up(max(n, _ALIGN), _ALIGN)
    # Row tile: as large as possible while keeping >= 2 row tiles (megacore on v7x).
    tm = min(n_pad, _ALIGN)
    for cand in (1024, 512, 256):
        if cand <= tm_max and n_pad % cand == 0 and n_pad // cand >= 2:
            tm = cand
            break
    # Contraction tile: largest divisor of n_pad (longer contiguous DMA rows).
    tk = min(n_pad, _ALIGN)
    for cand in (2048, 1024, 512, 256):
        if cand <= tk_max and n_pad % cand == 0:
            tk = cand
            break
    return n_pad, tm, tk


# ----------------------------------------------------------------------------
# Normalized adjacency (PyG gcn_norm), built straight into the padded buffer
# and quantized to int8 in one pass.
# ----------------------------------------------------------------------------
def build_normalized_adjacency_f32(edge_index, num_nodes, n_pad=None):
    if n_pad is None:
        n_pad = num_nodes
    row, col = edge_index[0], edge_index[1]
    loop = jnp.arange(num_nodes, dtype=edge_index.dtype)
    row = jnp.concatenate([row, loop])
    col = jnp.concatenate([col, loop])
    ew = jnp.ones(row.shape[0], dtype=jnp.float32)
    deg = jnp.zeros((num_nodes,), jnp.float32).at[col].add(ew)
    deg_inv_sqrt = jnp.where(deg > 0, 1.0 / jnp.sqrt(deg), 0.0)
    norm = deg_inv_sqrt[row] * ew * deg_inv_sqrt[col]
    # out[i] = sum_{edges row->col=i} norm * x[row]  -> scatter onto (col, row)
    return jnp.zeros((n_pad, n_pad), jnp.float32).at[col, row].add(norm)


def build_normalized_adjacency_q(edge_index, num_nodes, n_pad):
    a = build_normalized_adjacency_f32(edge_index, num_nodes, n_pad)
    return jnp.round(jnp.clip(a * _A_SCALE, -128.0, 127.0)).astype(jnp.int8)


# ----------------------------------------------------------------------------
# Wrapper: pad, quantize, run both layers, slice
# ----------------------------------------------------------------------------
def gcn_encoder_pallas(x, edge_index, w1, b1, w2, b2):
    n, in_ch = x.shape
    hidden = w1.shape[1]
    out_ch = w2.shape[1]

    n_pad, tm, tk = _choose_tiles(n)
    in_pad = _round_up(in_ch, _LANE)
    hid_pad = _round_up(hidden, _LANE)
    out_pad = _round_up(out_ch, _LANE)

    a_q = build_normalized_adjacency_q(edge_index, n, n_pad)

    x_p = jnp.zeros((n_pad, in_pad), jnp.bfloat16).at[:n, :in_ch].set(
        x.astype(jnp.bfloat16))
    # Weights in bf16 with the int8 dequant scale folded in (bf16 finalize matmul).
    w1_p = jnp.zeros((in_pad, hid_pad), jnp.bfloat16).at[:in_ch, :hidden].set(
        (w1 / _A_SCALE).astype(jnp.bfloat16))
    b1_p = jnp.zeros((1, hid_pad), jnp.float32).at[:, :hidden].set(
        b1.reshape(1, hidden))
    w2_p = jnp.zeros((hid_pad, out_pad), jnp.bfloat16).at[:hidden, :out_ch].set(
        (w2 / _A_SCALE).astype(jnp.bfloat16))
    b2_p = jnp.zeros((1, out_pad), jnp.float32).at[:, :out_ch].set(
        b2.reshape(1, out_ch))

    def resident(c_in):
        return n_pad * c_in * 2 <= _V_RESIDENT_BYTES

    # Layer 1: H = relu((A_hat @ X) @ W1 + b1)   (bf16 output feeds layer 2)
    h_p = _gcn_layer(a_q, x_p, w1_p, b1_p, relu=True, out_dtype=jnp.bfloat16,
                     tm=tm, tk=tk, v_resident=resident(in_pad))
    # Layer 2: out = (A_hat @ H) @ W2 + b2
    o_p = _gcn_layer(a_q, h_p, w2_p, b2_p, relu=False, out_dtype=jnp.float32,
                     tm=tm, tk=tk, v_resident=resident(hid_pad))
    return o_p[:n, :out_ch]


# ----------------------------------------------------------------------------
# Parameter init (deterministic; GCNConv Linear weight stored transposed [in, out])
# ----------------------------------------------------------------------------
def init_params(key, in_channels, out_channels):
    hidden = out_channels * 2
    k1, k2 = jax.random.split(key)
    s1 = 1.0 / jnp.sqrt(jnp.float32(in_channels))
    s2 = 1.0 / jnp.sqrt(jnp.float32(hidden))
    w1 = jax.random.uniform(k1, (in_channels, hidden), jnp.float32, -s1, s1)
    w2 = jax.random.uniform(k2, (hidden, out_channels), jnp.float32, -s2, s2)
    b1 = jnp.zeros((1, hidden), jnp.float32)
    b2 = jnp.zeros((1, out_channels), jnp.float32)
    return w1, b1, w2, b2


# ----------------------------------------------------------------------------
# Pure-JAX references
# ----------------------------------------------------------------------------
def gcn_encoder_ref_f32(a_hat, x, w1, b1, w2, b2):
    h = jnp.maximum(a_hat @ (x @ w1) + b1, 0.0)
    return a_hat @ (h @ w2) + b2


def gcn_encoder_ref_kernel_numerics(a_hat, x, w1, b1, w2, b2):
    # Emulates the kernel: int8-quantized A_hat (scale folded into bf16 W),
    # bf16 operands with f32 accumulation, bf16 activations between layers.
    aq = jnp.round(jnp.clip(a_hat * _A_SCALE, -128.0, 127.0)).astype(
        jnp.int8).astype(jnp.float32)

    def layer(v, w, b, relu):
        vb = v.astype(jnp.bfloat16).astype(jnp.float32)
        acc = aq @ vb
        ws = (w / _A_SCALE).astype(jnp.bfloat16).astype(jnp.float32)
        y = acc.astype(jnp.bfloat16).astype(jnp.float32) @ ws + b
        return jnp.maximum(y, 0.0) if relu else y

    h = layer(x, w1, b1, True).astype(jnp.bfloat16).astype(jnp.float32)
    return layer(h, w2, b2, False)


if __name__ == "__main__":
    key = jax.random.PRNGKey(0)
    kx, kp = jax.random.split(key)

    num_nodes = 16
    in_channels = 8
    out_channels = 8  # hidden = 16

    x = jax.random.normal(kx, (num_nodes, in_channels), jnp.float32)

    # deterministic small graph: ring edges in both directions
    src = jnp.arange(num_nodes, dtype=jnp.int32)
    dst = (src + 1) % num_nodes
    edge_index = jnp.stack(
        [jnp.concatenate([src, dst]), jnp.concatenate([dst, src])], axis=0
    )

    w1, b1, w2, b2 = init_params(kp, in_channels, out_channels)

    out = gcn_encoder_pallas(x, edge_index, w1, b1, w2, b2)
    out = jax.block_until_ready(out)
    assert out.shape == (num_nodes, out_channels)

    a_hat = build_normalized_adjacency_f32(edge_index, num_nodes)
    ref_q = gcn_encoder_ref_kernel_numerics(a_hat, x, w1, b1, w2, b2)
    ref_f = gcn_encoder_ref_f32(a_hat, x, w1, b1, w2, b2)
    assert jnp.allclose(out, ref_q, atol=3e-3, rtol=3e-3)
    assert jnp.allclose(out, ref_f, atol=6e-2, rtol=6e-2)

    print("KERNEL_OK")
</pallas_src>

<mosaic_0001>
module attributes {stable_mosaic.version = 11 : i64} {
  func.func @_gcn_layer_kernel(%arg0: i32, %arg1: i32, %arg2: memref<256x256xi8, #tpu.memory_space<vmem>>, %arg3: memref<256x128xbf16, #tpu.memory_space<vmem>>, %arg4: memref<128x128xbf16, #tpu.memory_space<vmem>>, %arg5: memref<1x128xf32, #tpu.memory_space<vmem>>, %arg6: memref<256x128xbf16, #tpu.memory_space<vmem>>, %arg7: memref<256x128xf32, #tpu.memory_space<vmem>>) attributes {dimension_semantics = [#tpu.dimension_semantics<parallel>, #tpu.dimension_semantics<arbitrary>], iteration_bounds = array<i64: 1, 1>, scalar_prefetch = 0 : i64, scratch_operands = 1 : i64, tpu.core_type = #tpu.core_type<tc>, window_params = [{transform_indices = @transform_0, window_bounds = array<i64: 256, 256>}, {pipeline_mode = #tpu.pipeline_mode<synchronous>, transform_indices = @transform_1, window_bounds = array<i64: 256, 128>}, {pipeline_mode = #tpu.pipeline_mode<synchronous>, transform_indices = @transform_2, window_bounds = array<i64: 128, 128>}, {pipeline_mode = #tpu.pipeline_mode<synchronous>, transform_indices = @transform_3, window_bounds = array<i64: 1, 128>}, {transform_indices = @transform_4, window_bounds = array<i64: 256, 128>}]} {
    %c0_i32 = arith.constant 0 : i32
    %0 = arith.cmpi eq, %arg1, %c0_i32 : i32
    %1 = arith.extui %0 : i1 to i32
    %c0_i32_0 = arith.constant 0 : i32
    %2 = arith.cmpi ne, %1, %c0_i32_0 : i32
    scf.if %2 {
      %cst_9 = arith.constant 0.000000e+00 : f32
      %16 = vector.broadcast %cst_9 : f32 to vector<256x128xf32>
      %c0_10 = arith.constant 0 : index
      %c0_11 = arith.constant 0 : index
      %17 = vector.load %arg7[%c0_10, %c0_11] : memref<256x128xf32, #tpu.memory_space<vmem>>, vector<256x128xf32>
      tpu.vector_store %arg7[%c0_10, %c0_11], %16 {strides = array<i32>} : memref<256x128xf32, #tpu.memory_space<vmem>>, vector<256x128xf32>,
    } else {
    }
    %c0 = arith.constant 0 : index
    %c0_1 = arith.constant 0 : index
    %3 = vector.load %arg2[%c0, %c0_1] : memref<256x256xi8, #tpu.memory_space<vmem>>, vector<256x256xi8>
    %4 = arith.sitofp %3 : vector<256x256xi8> to vector<256x256xbf16>
    %c256_i32 = arith.constant 256 : i32
    %5 = arith.muli %arg1, %c256_i32 : i32
    %6 = tpu.assume_multiple %5, 256 : i32
    %7 = arith.index_cast %6 : i32 to index
    %c0_2 = arith.constant 0 : index
    %8 = vector.load %arg3[%7, %c0_2] : memref<256x128xbf16, #tpu.memory_space<vmem>>, vector<256x128xbf16>
    %c0_3 = arith.constant 0 : index
    %c0_4 = arith.constant 0 : index
    %9 = vector.load %arg7[%c0_3, %c0_4] : memref<256x128xf32, #tpu.memory_space<vmem>>, vector<256x128xf32>
    %cst = arith.constant dense<0.000000e+00> : vector<256x128xf32>
    %10 = tpu.matmul %4, %8, %cst {dimension_numbers = #tpu.dot_dimension_numbers<[1], [0], [0], [1], [0, 0, 1, 1], [], []>} : vector<256x256xbf16>, vector<256x128xbf16>, vector<256x128xf32> -> vector<256x128xf32>
    %11 = arith.addf %9, %10 : vector<256x128xf32>
    %c0_5 = arith.constant 0 : index
    %c0_6 = arith.constant 0 : index
    %12 = vector.load %arg7[%c0_5, %c0_6] : memref<256x128xf32, #tpu.memory_space<vmem>>, vector<256x128xf32>
    tpu.vector_store %arg7[%c0_5, %c0_6], %11 {strides = array<i32>} : memref<256x128xf32, #tpu.memory_space<vmem>>, vector<256x128xf32>,
    %c0_i32_7 = arith.constant 0 : i32
    %13 = arith.cmpi eq, %arg1, %c0_i32_7 : i32
    %14 = arith.extui %13 : i1 to i32
    %c0_i32_8 = arith.constant 0 : i32
    %15 = arith.cmpi ne, %14, %c0_i32_8 : i32
    scf.if %15 {
      %c0_9 = arith.constant 0 : index
      %c0_10 = arith.constant 0 : index
      %16 = vector.load %arg7[%c0_9, %c0_10] : memref<256x128xf32, #tpu.memory_space<vmem>>, vector<256x128xf32>
      %17 = arith.truncf %16 : vector<256x128xf32> to vector<256x128xbf16>
      %c0_11 = arith.constant 0 : index
      %c0_12 = arith.constant 0 : index
      %18 = vector.load %arg4[%c0_11, %c0_12] : memref<128x128xbf16, #tpu.memory_space<vmem>>, vector<128x128xbf16>
      %cst_13 = arith.constant dense<0.000000e+00> : vector<256x128xf32>
      %19 = tpu.matmul %17, %18, %cst_13 {dimension_numbers = #tpu.dot_dimension_numbers<[1], [0], [0], [1], [0, 0, 1, 1], [], []>} : vector<256x128xbf16>, vector<128x128xbf16>, vector<256x128xf32> -> vector<256x128xf32>
      %c0_14 = arith.constant 0 : index
      %c0_15 = arith.constant 0 : index
      %20 = vector.load %arg5[%c0_14, %c0_15] : memref<1x128xf32, #tpu.memory_space<vmem>>, vector<1x128xf32>
      %21 = vector.broadcast %20 : vector<1x128xf32> to vector<256x128xf32>
      %22 = arith.addf %19, %21 : vector<256x128xf32>
      %cst_16 = arith.constant 0.000000e+00 : f32
      %23 = vector.broadcast %cst_16 : f32 to vector<256x128xf32>
      %24 = arith.maximumf %22, %23 : vector<256x128xf32>
      %25 = arith.truncf %24 : vector<256x128xf32> to vector<256x128xbf16>
      %c0_17 = arith.constant 0 : index
      %c0_18 = arith.constant 0 : index
      %26 = vector.load %arg6[%c0_17, %c0_18] : memref<256x128xbf16, #tpu.memory_space<vmem>>, vector<256x128xbf16>
      tpu.vector_store %arg6[%c0_17, %c0_18], %25 {strides = array<i32>} : memref<256x128xbf16, #tpu.memory_space<vmem>>, vector<256x128xbf16>,
    } else {
    }
    return
  }
  func.func @transform_0(%arg0: i32, %arg1: i32) -> (i32, i32) {
    %c0_i32 = arith.constant 0 : i32
    return %arg0, %arg1 : i32, i32
  }
  func.func @transform_1(%arg0: i32, %arg1: i32) -> (i32, i32) {
    %c0_i32 = arith.constant 0 : i32
    %c0_i32_0 = arith.constant 0 : i32
    %c0_i32_1 = arith.constant 0 : i32
    return %c0_i32, %c0_i32_0 : i32, i32
  }
  func.func @transform_2(%arg0: i32, %arg1: i32) -> (i32, i32) {
    %c0_i32 = arith.constant 0 : i32
    %c0_i32_0 = arith.constant 0 : i32
    %c0_i32_1 = arith.constant 0 : i32
    return %c0_i32, %c0_i32_0 : i32, i32
  }
  func.func @transform_3(%arg0: i32, %arg1: i32) -> (i32, i32) {
    %c0_i32 = arith.constant 0 : i32
    %c0_i32_0 = arith.constant 0 : i32
    %c0_i32_1 = arith.constant 0 : i32
    return %c0_i32, %c0_i32_0 : i32, i32
  }
  func.func @transform_4(%arg0: i32, %arg1: i32) -> (i32, i32) {
    %c0_i32 = arith.constant 0 : i32
    %c0_i32_0 = arith.constant 0 : i32
    return %arg0, %c0_i32 : i32, i32
  }
}

</mosaic_0001>

<bundles_post_ra>
// kernel: tpu_custom_call.1
= control target key start
LH: loop header
LB: loop body
LE: loop exit
PB: predicated region body
PF: predicated region fallthrough
CT: control target
= control target key end

     0   :  { %9 = vsyncpa [#allocation4], 0  ;;  %s1702_s0 = inlined_call_operand.hbm [shape: s8[256,256], index: 0, kind: input, shape index: {}]   ;;  %s1703_s1 = inlined_call_operand.hbm [shape: bf16[256,128], index: 1, kind: input, shape index: {}]   ;;  %s1704_s2 = inlined_call_operand.hbm [shape: bf16[128,128], index: 2, kind: input, shape index: {}]   ;;  %s1705_s3 = inlined_call_operand.vmem [shape: f32[1,128], index: 3, kind: input, shape index: {}]   ;;  %s1706_s4 = inlined_call_operand.hbm [shape: bf16[256,128], index: 4, kind: output, shape index: {}]  }
   0x1   :  { %10 = vsyncpa [#allocation7], 0 }
   0x2   :  { %11 = vsyncpa [#allocation5], 0  ;;  %s1539_s15 = smov [#allocation6]   ;;  %s1445_s19 = scalar_lea.hbm %s1703_s1, 2048 }
   0x3   :  { %s29_s16 = sshll.u32 %s1539_s15, 4  ;;  %p1446_p0 = scmp.ne.s32.totalorder %s1703_s1, %s1445_s19  ;;  %s30_s16 = int_to_ptr.vmem [resolvable:$true] %s29_s16 }
   0x4   :  { %p1449_p1 = scmp.lt.u32.totalorder %s1445_s19, %s1703_s1 }
   0x6   :  { %p1451_p2 = pnand %p1449_p1, %p1446_p0 }
   0x8   :  { %1454 = shalt.err (!%p1451_p2)
}
   0x9   :  { %s1455_s24 = scalar_lea.vmem %s30_s16, 2048  ;;  %p1460_p4 = scmp.lt.s32.totalorder %s30_s16, %s30_s16 }
   0xa   :  { %p1456_p3 = scmp.ne.s32.totalorder %s30_s16, %s1455_s24  ;;  %p1461_p5 = scmp.lt.s32.totalorder %s1455_s24, %s1455_s24 }
   0xc   :  { %p1462_p6 = por %p1461_p5, %p1460_p4 }
   0xe   :  { %p1463_p7 = pnand %p1462_p6, %p1456_p3 }
  0x10   :  { %1466 = shalt.err (!%p1463_p7)
}
  0x11   :  { %s1540_s25 = smov 64   ;;  %s1541_s26 = smov 4  }
  0x12   :  { %35 = dma.hbm_to_vmem [thread:$0]  %s1703_s1, 2048, %s30_s16, [#allocation7], %s1540_s25, %s1540_s25, %s1541_s26  }
  0x13   :  { %s1542_s29 = smov [#allocation3]   ;;  %s1467_s7 = scalar_lea.hbm %s1702_s0, 2048 }
  0x14   :  { %s17_s30 = sshll.u32 %s1542_s29, 4  ;;  %p1468_p8 = scmp.ne.s32.totalorder %s1702_s0, %s1467_s7  ;;  %s18_s30 = int_to_ptr.vmem [resolvable:$true] %s17_s30 }
  0x15   :  { %p1471_p9 = scmp.lt.u32.totalorder %s1467_s7, %s1702_s0 }
  0x17   :  { %p1473_p10 = pnand %p1471_p9, %p1468_p8 }
  0x19   :  { %1476 = shalt.err (!%p1473_p10)
}
  0x1a   :  { %s1477_s12 = scalar_lea.vmem %s18_s30, 2048  ;;  %p1482_p12 = scmp.lt.s32.totalorder %s18_s30, %s18_s30 }
  0x1b   :  { %p1478_p11 = scmp.ne.s32.totalorder %s18_s30, %s1477_s12  ;;  %p1483_p13 = scmp.lt.s32.totalorder %s1477_s12, %s1477_s12 }
  0x1d   :  { %p1484_p0 = por %p1483_p13, %p1482_p12 }
  0x1f   :  { %p1485_p1 = pnand %p1484_p0, %p1478_p11 }
  0x21   :  { %1488 = shalt.err (!%p1485_p1)
}
  0x22   :  { %s1543_s1 = smov 256   ;;  %s1544_s13 = smov 16  }
  0x23   :  { %23 = dma.hbm_to_vmem [thread:$0]  %s1702_s0, 2048, %s18_s30, [#allocation4], %s1543_s1, %s1543_s1, %s1544_s13  }
  0x24   :  { %s1545_s16 = smov [#allocation8]   ;;  %s1489_s20 = scalar_lea.hbm %s1704_s2, 1024 }
  0x25   :  { %s41_s17 = sshll.u32 %s1545_s16, 4  ;;  %p1490_p2 = scmp.ne.s32.totalorder %s1704_s2, %s1489_s20  ;;  %s42_s17 = int_to_ptr.vmem [resolvable:$true] %s41_s17 }
  0x26   :  { %p1493_p3 = scmp.lt.u32.totalorder %s1489_s20, %s1704_s2 }
  0x28   :  { %p1495_p4 = pnand %p1493_p3, %p1490_p2 }
  0x2a   :  { %1498 = shalt.err (!%p1495_p4)
}
  0x2b   :  { %s1499_s27 = scalar_lea.vmem %s42_s17, 1024  ;;  %p1504_p6 = scmp.lt.s32.totalorder %s42_s17, %s42_s17 }
  0x2c   :  { %p1500_p5 = scmp.ne.s32.totalorder %s42_s17, %s1499_s27  ;;  %p1505_p7 = scmp.lt.s32.totalorder %s1499_s27, %s1499_s27 }
  0x2e   :  { %p1506_p8 = por %p1505_p7, %p1504_p6 }
  0x30   :  { %p1507_p9 = pnand %p1506_p8, %p1500_p5 }
  0x32   :  { %1510 = shalt.err (!%p1507_p9)
}
  0x33   :  { %47 = dma.hbm_to_vmem [thread:$0]  %s1704_s2, 1024, %s42_s17, [#allocation7], %s1540_s25, %s1540_s25, %s1541_s26  }
  0x34   :  { %1533 = dma.done.wait [#allocation4], 2048  }
  0x35   :  { %1534 = vsyncadd [#allocation4], 4294965248 }
  0x36   :  { %1535 = dma.done.wait [#allocation7], 3072  }
  0x37   :  { %1536 = vsyncadd [#allocation7], 4294964224  ;;  %v1421_v0 = vld [vmem:[#allocation6 + $0x40] sm:$0xff]   ;;  %v1423_v2 = vld [vmem:[#allocation6 + $0x48] sm:$0xff]  }
  0x38   :  { %v1422_v1 = vld [vmem:[#allocation6] sm:$0xff]   ;;  %1213 = vmatprep.subr.bf16.mxu0 %v1421_v0  ;;  %1397 = vmatprep.subr.bf16.mxu1 %v1421_v0  ;;  %v1424_v3 = vld [vmem:[#allocation6 + $0x8] sm:$0xff]   ;;  %v1425_v4 = vld [vmem:[#allocation6 + $0x50] sm:$0xff]  }
  0x39   :  { %1214 = vmatpush3.bf16.msra.mxu0 %v1422_v1  ;;  %1405 = vmatpush3.bf16.msra.mxu1 %v1422_v1  ;;  %v1426_v5 = vld [vmem:[#allocation6 + $0x10] sm:$0xff]   ;;  %v1427_v6 = vld [vmem:[#allocation6 + $0x58] sm:$0xff]   ;;  %v1429_v8 = vld [vmem:[#allocation6 + $0x60] sm:$0xff]  }
  0x3a   :  { %1215 = vmatprep.subr.bf16.mxu0 %v1423_v2  ;;  %1398 = vmatprep.subr.bf16.mxu1 %v1423_v2  ;;  %v1428_v7 = vld [vmem:[#allocation6 + $0x18] sm:$0xff]   ;;  %v1430_v9 = vld [vmem:[#allocation6 + $0x20] sm:$0xff]   ;;  %v1431_v10 = vld [vmem:[#allocation6 + $0x68] sm:$0xff]  }
  0x3b   :  { %v97_v11 = vld [vmem:[#allocation3 + $0x8] sm:$0xff]  ;;  %v1433_v15 = vld [vmem:[#allocation6 + $0x70] sm:$0xff]   ;;  %v1435_v18 = vld [vmem:[#allocation6 + $0x78] sm:$0xff]  }
  0x3c   :  { %v113_v12 = vunpack.c.l.s8.bf16 %v97_v11  ;;  %v1432_v13 = vld [vmem:[#allocation6 + $0x28] sm:$0xff]   ;;  %v1434_v17 = vld [vmem:[#allocation6 + $0x30] sm:$0xff]   ;;  %v1436_v19 = vld [vmem:[#allocation6 + $0x38] sm:$0xff]   ;;  %v115_v24 = vunpack.c.h.s8.bf16 %v97_v11 }
  0x3d   :  { %1216 = vmatpush3.bf16.msra.mxu0 %v1424_v3  ;;  %1406 = vmatpush3.bf16.msra.mxu1 %v1424_v3  ;;  %v109_v14 = vld [vmem:[#allocation3 + $0x68] sm:$0xff]  ;;  %v96_v20 = vld [vmem:[#allocation3] sm:$0xff]  ;;  %v99_v28 = vld [vmem:[#allocation3 + $0x18] sm:$0xff] }
  0x3e   :  { %1217 = vmatprep.subr.bf16.mxu0 %v1425_v4  ;;  %1399 = vmatprep.subr.bf16.mxu1 %v1425_v4  ;;  %v137_v16 = vunpack.c.l.s8.bf16 %v109_v14  ;;  %v108_v21 = vld [vmem:[#allocation3 + $0x60] sm:$0xff]  ;;  %v112_v23 = vunpack.c.l.s8.bf16 %v96_v20  ;;  %v139_v26 = vunpack.c.h.s8.bf16 %v109_v14  ;;  %v1438_v27 = vld [vmem:[#allocation8 + $0x8] sm:$0xff]   ;;  %v111_v29 = vld [vmem:[#allocation3 + $0x78] sm:$0xff]  ;;  %v114_v31 = vunpack.c.h.s8.bf16 %v96_v20 }
  0x3f   :  { %341 = vmatprep.mubr.bf16.mxu0 %v113_v12  ;;  %v1437_v22 = vld [vmem:[#allocation8] sm:$0xff]   ;;  %v136_v25 = vunpack.c.l.s8.bf16 %v108_v21  ;;  %v1439_v30 = vld [vmem:[#allocation8 + $0x10] sm:$0xff]   ;;  %v117_v32 = vunpack.c.l.s8.bf16 %v99_v28  ;;  %v138_v33 = vunpack.c.h.s8.bf16 %v108_v21  ;;  %v141_v34 = vunpack.c.l.s8.bf16 %v111_v29  ;;  %v1440_v35 = vld [vmem:[#allocation8 + $0x18] sm:$0xff]  }
  0x40   :  { %437 = vmatprep.mubr.bf16.mxu1 %v137_v16  ;;  %v98_v36 = vld [vmem:[#allocation3 + $0x10] sm:$0xff]  ;;  %v119_v39 = vunpack.c.h.s8.bf16 %v99_v28  ;;  %v143_v41 = vunpack.c.h.s8.bf16 %v111_v29  ;;  %v101_v42 = vld [vmem:[#allocation3 + $0x28] sm:$0xff]  ;;  %v100_v46 = vld [vmem:[#allocation3 + $0x20] sm:$0xff] }
  0x41   :  { %1218 = vmatpush3.bf16.msra.mxu0 %v1426_v5  ;;  %1407 = vmatpush3.bf16.msra.mxu1 %v1426_v5  ;;  %v110_v37 = vld [vmem:[#allocation3 + $0x70] sm:$0xff]  ;;  %v116_v38 = vunpack.c.l.s8.bf16 %v98_v36  ;;  %v118_v43 = vunpack.c.h.s8.bf16 %v98_v36  ;;  %v121_v44 = vunpack.c.l.s8.bf16 %v101_v42  ;;  %v120_v47 = vunpack.c.l.s8.bf16 %v100_v46  ;;  %v103_v49 = vld [vmem:[#allocation3 + $0x38] sm:$0xff]  ;;  %v105_v55 = vld [vmem:[#allocation3 + $0x48] sm:$0xff] }
  0x42   :  { %1219 = vmatprep.subr.bf16.mxu0 %v1427_v6  ;;  %1400 = vmatprep.subr.bf16.mxu1 %v1427_v6  ;;  %v140_v40 = vunpack.c.l.s8.bf16 %v110_v37  ;;  %v142_v45 = vunpack.c.h.s8.bf16 %v110_v37  ;;  %v123_v48 = vunpack.c.h.s8.bf16 %v101_v42  ;;  %v122_v50 = vunpack.c.h.s8.bf16 %v100_v46  ;;  %v102_v52 = vld [vmem:[#allocation3 + $0x30] sm:$0xff]  ;;  %v104_v58 = vld [vmem:[#allocation3 + $0x40] sm:$0xff]  ;;  %v107_v61 = vld [vmem:[#allocation3 + $0x58] sm:$0xff] }
  0x43   :  { %v125_v51 = vunpack.c.l.s8.bf16 %v103_v49  ;;  %v124_v53 = vunpack.c.l.s8.bf16 %v102_v52  ;;  %v127_v54 = vunpack.c.h.s8.bf16 %v103_v49  ;;  %v126_v56 = vunpack.c.h.s8.bf16 %v102_v52  ;;  %v106_v0 = vld [vmem:[#allocation3 + $0x50] sm:$0xff]  ;;  %v1441_v3 = vld [vmem:[#allocation8 + $0x20] sm:$0xff]   ;;  %v1442_v5 = vld [vmem:[#allocation8 + $0x28] sm:$0xff]  }
  0x44   :  { %v129_v57 = vunpack.c.l.s8.bf16 %v105_v55  ;;  %v128_v59 = vunpack.c.l.s8.bf16 %v104_v58  ;;  %v131_v60 = vunpack.c.h.s8.bf16 %v105_v55  ;;  %v130_v62 = vunpack.c.h.s8.bf16 %v104_v58  ;;  %v1443_v6 = vld [vmem:[#allocation8 + $0x30] sm:$0xff]  }
  0x45   :  { %1220 = vmatpush3.bf16.msra.mxu0 %v1428_v7  ;;  %1408 = vmatpush3.bf16.msra.mxu1 %v1428_v7  ;;  %v133_v63 = vunpack.c.l.s8.bf16 %v107_v61  ;;  %v132_v1 = vunpack.c.l.s8.bf16 %v106_v0  ;;  %v135_v2 = vunpack.c.h.s8.bf16 %v107_v61  ;;  %v134_v4 = vunpack.c.h.s8.bf16 %v106_v0  ;;  %v1444_v7 = vld [vmem:[#allocation8 + $0x38] sm:$0xff]  }
  0x46   :  { %1221 = vmatprep.subr.bf16.mxu0 %v1429_v8  ;;  %1401 = vmatprep.subr.bf16.mxu1 %v1429_v8 }
  0x49   :  { %1222 = vmatpush3.bf16.msra.mxu0 %v1430_v9  ;;  %1409 = vmatpush3.bf16.msra.mxu1 %v1430_v9 }
  0x4a   :  { %1223 = vmatprep.subr.bf16.mxu0 %v1431_v10  ;;  %1402 = vmatprep.subr.bf16.mxu1 %v1431_v10 }
  0x4d   :  { %1224 = vmatpush3.bf16.msra.mxu0 %v1432_v13  ;;  %1410 = vmatpush3.bf16.msra.mxu1 %v1432_v13 }
  0x4e   :  { %1225 = vmatprep.subr.bf16.mxu0 %v1433_v15  ;;  %1403 = vmatprep.subr.bf16.mxu1 %v1433_v15 }
  0x51   :  { %1226 = vmatpush3.bf16.msra.mxu0 %v1434_v17  ;;  %1411 = vmatpush3.bf16.msra.mxu1 %v1434_v17 }
  0x52   :  { %1227 = vmatprep.subr.bf16.mxu0 %v1435_v18  ;;  %1404 = vmatprep.subr.bf16.mxu1 %v1435_v18 }
  0x55   :  { %1228 = vmatpush3.bf16.msra.mxu0 %v1436_v19  ;;  %1412 = vmatpush3.bf16.msra.mxu1 %v1436_v19 }
  0x56   :  { %1349 = vmatprep.subr.bf16.mxu1 %v1437_v22 }
  0x58   :  { %342 = vmatmul.mubr.bf16.vlgmr.msra.gmra.mrb[0].mxu0 %v112_v23  ;;  %438 = vmatmul.mubr.bf16.vlgmr.msra.gmra.mrb[0].mxu1 %v136_v25 }
  0x59   :  { %349 = vmatprep.mubr.bf16.mxu0 %v115_v24  ;;  %445 = vmatprep.mubr.bf16.mxu1 %v139_v26 }
  0x5a   :  { %1350 = vmatpush3.bf16.msra.mxu1 %v1437_v22 }
  0x5b   :  { %1351 = vmatprep.subr.bf16.mxu1 %v1438_v27 }
  0x5e   :  { %1352 = vmatpush3.bf16.msra.mxu1 %v1438_v27 }
  0x5f   :  { %1353 = vmatprep.subr.bf16.mxu1 %v1439_v30 }
  0x60   :  { %350 = vmatmul.mubr.bf16.gmra.mrb[4].mxu0 %v114_v31  ;;  %446 = vmatmul.mubr.bf16.gmra.mrb[4].mxu1 %v138_v33 }
  0x61   :  { %357 = vmatprep.mubr.bf16.mxu0 %v117_v32  ;;  %453 = vmatprep.mubr.bf16.mxu1 %v141_v34 }
  0x62   :  { %1354 = vmatpush3.bf16.msra.mxu1 %v1439_v30 }
  0x63   :  { %1355 = vmatprep.subr.bf16.mxu1 %v1440_v35 }
  0x66   :  { %1356 = vmatpush3.bf16.msra.mxu1 %v1440_v35 }
  0x67   :  { %1357 = vmatprep.subr.bf16.mxu1 %v1441_v3 }
  0x68   :  { %358 = vmatmul.mubr.bf16.gmra.mrb[8].mxu0 %v116_v38  ;;  %454 = vmatmul.mubr.bf16.gmra.mrb[8].mxu1 %v140_v40 }
  0x69   :  { %365 = vmatprep.mubr.bf16.mxu0 %v119_v39  ;;  %461 = vmatprep.mubr.bf16.mxu1 %v143_v41 }
  0x6a   :  { %1358 = vmatpush3.bf16.msra.mxu1 %v1441_v3 }
  0x6b   :  { %1359 = vmatprep.subr.bf16.mxu1 %v1442_v5 }
  0x6e   :  { %1360 = vmatpush3.bf16.msra.mxu1 %v1442_v5 }
  0x6f   :  { %1361 = vmatprep.subr.bf16.mxu1 %v1443_v6 }
  0x70   :  { %366 = vmatmul.mubr.bf16.gmra.mrb[12].mxu0 %v118_v43  ;;  %462 = vmatmul.mubr.bf16.gmra.mrb[12].mxu1 %v142_v45 }
  0x71   :  { %373 = vmatprep.mubr.bf16.mxu0 %v121_v44 }
  0x72   :  { %1362 = vmatpush3.bf16.msra.mxu1 %v1443_v6 }
  0x73   :  { %1363 = vmatprep.subr.bf16.mxu1 %v1444_v7 }
  0x76   :  { %1364 = vmatpush3.bf16.msra.mxu1 %v1444_v7 }
  0x78   :  { %374 = vmatmul.mubr.bf16.gmra.mrb[16].mxu0 %v120_v47 }
  0x79   :  { %381 = vmatprep.mubr.bf16.mxu0 %v123_v48 }
  0x80   :  { %382 = vmatmul.mubr.bf16.gmra.mrb[20].mxu0 %v122_v50 }
  0x81   :  { %389 = vmatprep.mubr.bf16.mxu0 %v125_v51 }
  0x88   :  { %390 = vmatmul.mubr.bf16.gmra.mrb[24].mxu0 %v124_v53 }
  0x89   :  { %397 = vmatprep.mubr.bf16.mxu0 %v127_v54 }
  0x90   :  { %398 = vmatmul.mubr.bf16.gmra.mrb[28].mxu0 %v126_v56 }
  0x91   :  { %405 = vmatprep.mubr.bf16.mxu0 %v129_v57 }
  0x98   :  { %406 = vmatmul.mubr.bf16.gmra.mrb[32].mxu0 %v128_v59 }
  0x99   :  { %413 = vmatprep.mubr.bf16.mxu0 %v131_v60 }
  0xa0   :  { %414 = vmatmul.mubr.bf16.gmra.mrb[36].mxu0 %v130_v62 }
  0xa1   :  { %421 = vmatprep.mubr.bf16.mxu0 %v133_v63 }
  0xa8   :  { %422 = vmatmul.mubr.bf16.gmra.mrb[40].mxu0 %v132_v1 }
  0xa9   :  { %429 = vmatprep.mubr.bf16.mxu0 %v135_v2 }
  0xb0   :  { %430 = vmatmul.mubr.bf16.gmra.mrb[44].mxu0 %v134_v4 }
 0x12b   :  { %v1229_v8 = vpop.f32.mrb[0].mxu0  ;;  %v1301_v10 = vpop.f32.mrb[0].mxu1 }
 0x12c   :  { %v1230_v9 = vpop.f32.mrb[1].mxu0  ;;  %v1302_v13 = vpop.f32.mrb[1].mxu1 }
 0x12d   :  { %v1231_v11 = vadd.f32 %v1230_v9, %v1229_v8  ;;  %v1232_v12 = vpop.f32.mrb[2].mxu0  ;;  %v1614_v15 = vadd.f32 %v1302_v13, %v1301_v10  ;;  %v1304_v16 = vpop.f32.mrb[2].mxu1 }
 0x12e   :  { %v1233_v14 = vpop.f32.mrb[3].mxu0  ;;  %v1305_v18 = vpop.f32.mrb[3].mxu1 }
 0x12f   :  { %v1234_v17 = vadd.f32 %v1233_v14, %v1232_v12  ;;  %v1616_v19 = vadd.f32 %v1305_v18, %v1304_v16 }
 0x131   :  { %v569_v20 = vpack.c.bf16 %v1234_v17, %v1231_v11  ;;  %v581_v21 = vpack.c.bf16 %v1616_v19, %v1614_v15 }
 0x133   :  { %v1235_v22 = vpop.f32.mrb[4].mxu0  ;;  %1365 = vmatprep.mubr.bf16.mxu1 %v569_v20  ;;  %v1307_v24 = vpop.f32.mrb[4].mxu1 }
 0x134   :  { %v1236_v23 = vpop.f32.mrb[5].mxu0  ;;  %v1308_v27 = vpop.f32.mrb[5].mxu1 }
 0x135   :  { %v1237_v25 = vadd.f32 %v1236_v23, %v1235_v22  ;;  %v1238_v26 = vpop.f32.mrb[6].mxu0  ;;  %v1620_v29 = vadd.f32 %v1308_v27, %v1307_v24  ;;  %v1310_v30 = vpop.f32.mrb[6].mxu1 }
 0x136   :  { %v1239_v28 = vpop.f32.mrb[7].mxu0  ;;  %v1311_v32 = vpop.f32.mrb[7].mxu1 }
 0x137   :  { %v1240_v31 = vadd.f32 %v1239_v28, %v1238_v26  ;;  %v1622_v33 = vadd.f32 %v1311_v32, %v1310_v30 }
 0x139   :  { %v570_v34 = vpack.c.bf16 %v1240_v31, %v1237_v25  ;;  %v582_v35 = vpack.c.bf16 %v1622_v33, %v1620_v29 }
 0x13b   :  { %v1241_v36 = vpop.f32.mrb[8].mxu0  ;;  %1366 = vmatmul.mubr.bf16.vlgmr.msra.gmra.mrb[16].mxu1 %v570_v34  ;;  %v1313_v38 = vpop.f32.mrb[8].mxu1 }
 0x13c   :  { %v1242_v37 = vpop.f32.mrb[9].mxu0  ;;  %v1314_v41 = vpop.f32.mrb[9].mxu1 }
 0x13d   :  { %v1243_v39 = vadd.f32 %v1242_v37, %v1241_v36  ;;  %v1244_v40 = vpop.f32.mrb[10].mxu0  ;;  %v1626_v43 = vadd.f32 %v1314_v41, %v1313_v38  ;;  %v1316_v44 = vpop.f32.mrb[10].mxu1 }
 0x13e   :  { %v1245_v42 = vpop.f32.mrb[11].mxu0  ;;  %v1317_v46 = vpop.f32.mrb[11].mxu1 }
 0x13f   :  { %v1246_v45 = vadd.f32 %v1245_v42, %v1244_v40  ;;  %v1628_v47 = vadd.f32 %v1317_v46, %v1316_v44 }
 0x141   :  { %v571_v48 = vpack.c.bf16 %v1246_v45, %v1243_v39  ;;  %v583_v49 = vpack.c.bf16 %v1628_v47, %v1626_v43 }
 0x143   :  { %v1247_v50 = vpop.f32.mrb[12].mxu0  ;;  %1369 = vmatprep.mubr.bf16.mxu1 %v571_v48  ;;  %v1319_v52 = vpop.f32.mrb[12].mxu1 }
 0x144   :  { %v1248_v51 = vpop.f32.mrb[13].mxu0  ;;  %v1320_v55 = vpop.f32.mrb[13].mxu1 }
 0x145   :  { %v1249_v53 = vadd.f32 %v1248_v51, %v1247_v50  ;;  %v1250_v54 = vpop.f32.mrb[14].mxu0  ;;  %v1632_v57 = vadd.f32 %v1320_v55, %v1319_v52  ;;  %v1322_v58 = vpop.f32.mrb[14].mxu1 }
 0x146   :  { %v1251_v56 = vpop.f32.mrb[15].mxu0  ;;  %v1323_v60 = vpop.f32.mrb[15].mxu1 }
 0x147   :  { %v1252_v59 = vadd.f32 %v1251_v56, %v1250_v54  ;;  %v1634_v61 = vadd.f32 %v1323_v60, %v1322_v58 }
 0x149   :  { %v572_v62 = vpack.c.bf16 %v1252_v59, %v1249_v53  ;;  %v584_v63 = vpack.c.bf16 %v1634_v61, %v1632_v57 }
 0x14b   :  { %v1253_v0 = vpop.f32.mrb[16].mxu0  ;;  %1370 = vmatmul.mubr.bf16.gmra.mrb[20].mxu1 %v572_v62 }
 0x14c   :  { %v1254_v1 = vpop.f32.mrb[17].mxu0 }
 0x14d   :  { %v1255_v2 = vadd.f32 %v1254_v1, %v1253_v0  ;;  %v1256_v3 = vpop.f32.mrb[18].mxu0 }
 0x14e   :  { %v1257_v4 = vpop.f32.mrb[19].mxu0 }
 0x14f   :  { %v1258_v5 = vadd.f32 %v1257_v4, %v1256_v3  ;;  %v1653_v4 = vld [vmem:[%s1705_s3] ss:$0 sm:$0xff]  ;;  %s1546_s3 = smov [#allocation9]  }
 0x150   :  { %s1014_s30 = sshll.u32 %s1546_s3, 4  ;;  %s1015_s30 = int_to_ptr.vmem [resolvable:$true] %s1014_s30 }
 0x151   :  { %v573_v6 = vpack.c.bf16 %v1258_v5, %v1255_v2  ;;  %s1511_s5 = scalar_lea.vmem %s1015_s30, 2048  ;;  %p1516_p11 = scmp.lt.s32.totalorder %s1015_s30, %s1015_s30 }
 0x152   :  { %p1512_p10 = scmp.ne.s32.totalorder %s1015_s30, %s1511_s5  ;;  %p1517_p12 = scmp.lt.s32.totalorder %s1511_s5, %s1511_s5 }
 0x153   :  { %v1259_v7 = vpop.f32.mrb[20].mxu0  ;;  %1373 = vmatprep.mubr.bf16.mxu1 %v573_v6 }
 0x154   :  { %v1260_v8 = vpop.f32.mrb[21].mxu0  ;;  %p1518_p13 = por %p1517_p12, %p1516_p11 }
 0x155   :  { %v1261_v9 = vadd.f32 %v1260_v8, %v1259_v7  ;;  %v1262_v10 = vpop.f32.mrb[22].mxu0 }
 0x156   :  { %v1263_v11 = vpop.f32.mrb[23].mxu0  ;;  %p1519_p0 = pnand %p1518_p13, %p1512_p10 }
 0x157   :  { %v1264_v12 = vadd.f32 %v1263_v11, %v1262_v10 }
 0x159   :  { %v574_v13 = vpack.c.bf16 %v1264_v12, %v1261_v9 }
 0x15b   :  { %v1265_v14 = vpop.f32.mrb[24].mxu0  ;;  %1374 = vmatmul.mubr.bf16.gmra.mrb[24].mxu1 %v574_v13 }
 0x15c   :  { %v1266_v16 = vpop.f32.mrb[25].mxu0 }
 0x15d   :  { %v1267_v17 = vadd.f32 %v1266_v16, %v1265_v14  ;;  %v1268_v18 = vpop.f32.mrb[26].mxu0 }
 0x15e   :  { %v1269_v20 = vpop.f32.mrb[27].mxu0 }
 0x15f   :  { %v1270_v22 = vadd.f32 %v1269_v20, %v1268_v18 }
 0x161   :  { %v575_v23 = vpack.c.bf16 %v1270_v22, %v1267_v17 }
 0x163   :  { %v1271_v24 = vpop.f32.mrb[28].mxu0  ;;  %1377 = vmatprep.mubr.bf16.mxu1 %v575_v23 }
 0x164   :  { %v1272_v25 = vpop.f32.mrb[29].mxu0 }
 0x165   :  { %v1273_v26 = vadd.f32 %v1272_v25, %v1271_v24  ;;  %v1274_v27 = vpop.f32.mrb[30].mxu0 }
 0x166   :  { %v1275_v28 = vpop.f32.mrb[31].mxu0 }
 0x167   :  { %v1276_v30 = vadd.f32 %v1275_v28, %v1274_v27 }
 0x169   :  { %v576_v31 = vpack.c.bf16 %v1276_v30, %v1273_v26 }
 0x16b   :  { %v1277_v32 = vpop.f32.mrb[32].mxu0  ;;  %1378 = vmatmul.mubr.bf16.gmra.mrb[28].mxu1 %v576_v31 }
 0x16c   :  { %v1278_v34 = vpop.f32.mrb[33].mxu0 }
 0x16d   :  { %v1279_v36 = vadd.f32 %v1278_v34, %v1277_v32  ;;  %v1280_v37 = vpop.f32.mrb[34].mxu0 }
 0x16e   :  { %v1281_v38 = vpop.f32.mrb[35].mxu0 }
 0x16f   :  { %v1282_v39 = vadd.f32 %v1281_v38, %v1280_v37 }
 0x171   :  { %v577_v40 = vpack.c.bf16 %v1282_v39, %v1279_v36 }
 0x173   :  { %v1283_v41 = vpop.f32.mrb[36].mxu0  ;;  %1381 = vmatprep.mubr.bf16.mxu1 %v577_v40 }
 0x174   :  { %v1284_v42 = vpop.f32.mrb[37].mxu0 }
 0x175   :  { %v1285_v44 = vadd.f32 %v1284_v42, %v1283_v41  ;;  %v1286_v45 = vpop.f32.mrb[38].mxu0 }
 0x176   :  { %v1287_v46 = vpop.f32.mrb[39].mxu0 }
 0x177   :  { %v1288_v48 = vadd.f32 %v1287_v46, %v1286_v45 }
 0x179   :  { %v578_v50 = vpack.c.bf16 %v1288_v48, %v1285_v44 }
 0x17b   :  { %v1289_v51 = vpop.f32.mrb[40].mxu0  ;;  %1382 = vmatmul.mubr.bf16.gmra.mrb[32].mxu1 %v578_v50 }
 0x17c   :  { %v1290_v52 = vpop.f32.mrb[41].mxu0 }
 0x17d   :  { %v1291_v53 = vadd.f32 %v1290_v52, %v1289_v51  ;;  %v1292_v54 = vpop.f32.mrb[42].mxu0 }
 0x17e   :  { %v1293_v55 = vpop.f32.mrb[43].mxu0 }
 0x17f   :  { %v1294_v56 = vadd.f32 %v1293_v55, %v1292_v54 }
 0x181   :  { %v579_v58 = vpack.c.bf16 %v1294_v56, %v1291_v53 }
 0x183   :  { %v1295_v59 = vpop.f32.mrb[44].mxu0  ;;  %1385 = vmatprep.mubr.bf16.mxu1 %v579_v58 }
 0x184   :  { %v1296_v60 = vpop.f32.mrb[45].mxu0 }
 0x185   :  { %v1297_v62 = vadd.f32 %v1296_v60, %v1295_v59  ;;  %v1298_v0 = vpop.f32.mrb[46].mxu0 }
 0x186   :  { %v1299_v1 = vpop.f32.mrb[47].mxu0 }
 0x187   :  { %v1300_v2 = vadd.f32 %v1299_v1, %v1298_v0 }
 0x189   :  { %v580_v3 = vpack.c.bf16 %v1300_v2, %v1297_v62 }
 0x18b   :  { %1386 = vmatmul.mubr.bf16.gmra.mrb[36].mxu1 %v580_v3 }
 0x18c   :  { %1389 = vmatprep.mubr.bf16.mxu1 %v581_v21 }
 0x193   :  { %1390 = vmatmul.mubr.bf16.gmra.mrb[40].mxu1 %v582_v35 }
 0x194   :  { %1393 = vmatprep.mubr.bf16.mxu1 %v583_v49 }
 0x19b   :  { %1394 = vmatmul.mubr.bf16.gmra.mrb[44].mxu1 %v584_v63 }
 0x20e   :  { %v1367_v5 = vpop.f32.mrb[16].mxu1 }
 0x20f   :  { %v699_v15 = vadd.f32 %v1367_v5, %v1653_v4  ;;  %v690_v19 = vpop.f32.mrb[17].mxu1 }
 0x210   :  { %v691_v21 = vadd.f32 %v1653_v4, %v690_v19  ;;  %v1368_v29 = vpop.f32.mrb[18].mxu1 }
 0x211   :  { %v702_v33 = vadd.f32 %v1368_v29, %v1653_v4  ;;  %v693_v35 = vpop.f32.mrb[19].mxu1  ;;  %v819_v47 = vmax.f32 %v699_v15, 0.0 }
 0x212   :  { %v694_v43 = vadd.f32 %v1653_v4, %v693_v35  ;;  %v817_v57 = vmax.f32 %v691_v21, 0.0 }
 0x213   :  { %v820_v49 = vmax.f32 %v702_v33, 0.0 }
 0x214   :  { %v818_v61 = vmax.f32 %v694_v43, 0.0 }
 0x215   :  { %v1126_v63 = vpack.c.bf16 %v820_v49, %v819_v47 }
 0x216   :  { %v1121_v6 = vpack.c.bf16 %v818_v61, %v817_v57 }
 0x217   :  { %1198 = vst [vmem:[#allocation9 + $0x8] sm:$0xff] %v1126_v63  }
 0x218   :  { %1122 = vst [vmem:[#allocation9] sm:$0xff] %v1121_v6  }
 0x21e   :  { %v1371_v7 = vpop.f32.mrb[20].mxu1 }
 0x21f   :  { %v715_v8 = vadd.f32 %v1371_v7, %v1653_v4  ;;  %v706_v9 = vpop.f32.mrb[21].mxu1 }
 0x220   :  { %v707_v10 = vadd.f32 %v1653_v4, %v706_v9  ;;  %v1372_v11 = vpop.f32.mrb[22].mxu1 }
 0x221   :  { %v718_v12 = vadd.f32 %v1372_v11, %v1653_v4  ;;  %v709_v13 = vpop.f32.mrb[23].mxu1  ;;  %v823_v16 = vmax.f32 %v715_v8, 0.0 }
 0x222   :  { %v710_v14 = vadd.f32 %v1653_v4, %v709_v13  ;;  %v821_v18 = vmax.f32 %v707_v10, 0.0 }
 0x223   :  { %v824_v17 = vmax.f32 %v718_v12, 0.0 }
 0x224   :  { %v822_v20 = vmax.f32 %v710_v14, 0.0 }
 0x225   :  { %v1136_v22 = vpack.c.bf16 %v824_v17, %v823_v16 }
 0x226   :  { %v1131_v23 = vpack.c.bf16 %v822_v20, %v821_v18 }
 0x227   :  { %1200 = vst [vmem:[#allocation9 + $0x18] sm:$0xff] %v1136_v22  }
 0x228   :  { %1199 = vst [vmem:[#allocation9 + $0x10] sm:$0xff] %v1131_v23  }
 0x22e   :  { %v1375_v24 = vpop.f32.mrb[24].mxu1 }
 0x22f   :  { %v731_v25 = vadd.f32 %v1375_v24, %v1653_v4  ;;  %v722_v26 = vpop.f32.mrb[25].mxu1 }
 0x230   :  { %v723_v27 = vadd.f32 %v1653_v4, %v722_v26  ;;  %v1376_v28 = vpop.f32.mrb[26].mxu1 }
 0x231   :  { %v734_v30 = vadd.f32 %v1376_v28, %v1653_v4  ;;  %v725_v31 = vpop.f32.mrb[27].mxu1  ;;  %v827_v34 = vmax.f32 %v731_v25, 0.0 }
 0x232   :  { %v726_v32 = vadd.f32 %v1653_v4, %v725_v31  ;;  %v825_v37 = vmax.f32 %v723_v27, 0.0 }
 0x233   :  { %v828_v36 = vmax.f32 %v734_v30, 0.0 }
 0x234   :  { %v826_v38 = vmax.f32 %v726_v32, 0.0 }
 0x235   :  { %v1146_v39 = vpack.c.bf16 %v828_v36, %v827_v34 }
 0x236   :  { %v1141_v40 = vpack.c.bf16 %v826_v38, %v825_v37 }
 0x237   :  { %1202 = vst [vmem:[#allocation9 + $0x28] sm:$0xff] %v1146_v39  }
 0x238   :  { %1201 = vst [vmem:[#allocation9 + $0x20] sm:$0xff] %v1141_v40  }
 0x23e   :  { %v1379_v41 = vpop.f32.mrb[28].mxu1 }
 0x23f   :  { %v747_v42 = vadd.f32 %v1379_v41, %v1653_v4  ;;  %v738_v44 = vpop.f32.mrb[29].mxu1 }
 0x240   :  { %v739_v45 = vadd.f32 %v1653_v4, %v738_v44  ;;  %v1380_v46 = vpop.f32.mrb[30].mxu1 }
 0x241   :  { %v750_v48 = vadd.f32 %v1380_v46, %v1653_v4  ;;  %v741_v50 = vpop.f32.mrb[31].mxu1  ;;  %v831_v52 = vmax.f32 %v747_v42, 0.0 }
 0x242   :  { %v742_v51 = vadd.f32 %v1653_v4, %v741_v50  ;;  %v829_v54 = vmax.f32 %v739_v45, 0.0 }
 0x243   :  { %v832_v53 = vmax.f32 %v750_v48, 0.0 }
 0x244   :  { %v830_v55 = vmax.f32 %v742_v51, 0.0 }
 0x245   :  { %v1156_v56 = vpack.c.bf16 %v832_v53, %v831_v52 }
 0x246   :  { %v1151_v58 = vpack.c.bf16 %v830_v55, %v829_v54 }
 0x247   :  { %1204 = vst [vmem:[#allocation9 + $0x38] sm:$0xff] %v1156_v56  }
 0x248   :  { %1203 = vst [vmem:[#allocation9 + $0x30] sm:$0xff] %v1151_v58  }
 0x24e   :  { %v1383_v59 = vpop.f32.mrb[32].mxu1 }
 0x24f   :  { %v763_v60 = vadd.f32 %v1383_v59, %v1653_v4  ;;  %v754_v62 = vpop.f32.mrb[33].mxu1 }
 0x250   :  { %v755_v0 = vadd.f32 %v1653_v4, %v754_v62  ;;  %v1384_v1 = vpop.f32.mrb[34].mxu1 }
 0x251   :  { %v766_v2 = vadd.f32 %v1384_v1, %v1653_v4  ;;  %v757_v3 = vpop.f32.mrb[35].mxu1  ;;  %v835_v15 = vmax.f32 %v763_v60, 0.0 }
 0x252   :  { %v758_v5 = vadd.f32 %v1653_v4, %v757_v3  ;;  %v833_v21 = vmax.f32 %v755_v0, 0.0 }
 0x253   :  { %v836_v19 = vmax.f32 %v766_v2, 0.0 }
 0x254   :  { %v834_v29 = vmax.f32 %v758_v5, 0.0 }
 0x255   :  { %v1166_v33 = vpack.c.bf16 %v836_v19, %v835_v15 }
 0x256   :  { %v1161_v35 = vpack.c.bf16 %v834_v29, %v833_v21 }
 0x257   :  { %1206 = vst [vmem:[#allocation9 + $0x48] sm:$0xff] %v1166_v33  }
 0x258   :  { %1205 = vst [vmem:[#allocation9 + $0x40] sm:$0xff] %v1161_v35  }
 0x25e   :  { %v1387_v43 = vpop.f32.mrb[36].mxu1 }
 0x25f   :  { %v779_v47 = vadd.f32 %v1387_v43, %v1653_v4  ;;  %v770_v49 = vpop.f32.mrb[37].mxu1 }
 0x260   :  { %v771_v57 = vadd.f32 %v1653_v4, %v770_v49  ;;  %v1388_v61 = vpop.f32.mrb[38].mxu1 }
 0x261   :  { %v782_v63 = vadd.f32 %v1388_v61, %v1653_v4  ;;  %v773_v6 = vpop.f32.mrb[39].mxu1  ;;  %v839_v8 = vmax.f32 %v779_v47, 0.0 }
 0x262   :  { %v774_v7 = vadd.f32 %v1653_v4, %v773_v6  ;;  %v837_v10 = vmax.f32 %v771_v57, 0.0 }
 0x263   :  { %v840_v9 = vmax.f32 %v782_v63, 0.0 }
 0x264   :  { %v838_v11 = vmax.f32 %v774_v7, 0.0 }
 0x265   :  { %v1176_v12 = vpack.c.bf16 %v840_v9, %v839_v8 }
 0x266   :  { %v1171_v13 = vpack.c.bf16 %v838_v11, %v837_v10  ;;  %v1391_v14 = vpop.f32.mrb[40].mxu1 }
 0x267   :  { %1208 = vst [vmem:[#allocation9 + $0x58] sm:$0xff] %v1176_v12   ;;  %v795_v16 = vadd.f32 %v1391_v14, %v1653_v4  ;;  %v786_v17 = vpop.f32.mrb[41].mxu1 }
 0x268   :  { %1207 = vst [vmem:[#allocation9 + $0x50] sm:$0xff] %v1171_v13   ;;  %v787_v18 = vadd.f32 %v1653_v4, %v786_v17  ;;  %v1392_v20 = vpop.f32.mrb[42].mxu1 }
 0x269   :  { %v798_v22 = vadd.f32 %v1392_v20, %v1653_v4  ;;  %v789_v23 = vpop.f32.mrb[43].mxu1  ;;  %v843_v25 = vmax.f32 %v795_v16, 0.0 }
 0x26a   :  { %v790_v24 = vadd.f32 %v1653_v4, %v789_v23  ;;  %v841_v27 = vmax.f32 %v787_v18, 0.0 }
 0x26b   :  { %v844_v26 = vmax.f32 %v798_v22, 0.0 }
 0x26c   :  { %v842_v28 = vmax.f32 %v790_v24, 0.0 }
 0x26d   :  { %v1186_v30 = vpack.c.bf16 %v844_v26, %v843_v25 }
 0x26e   :  { %v1181_v31 = vpack.c.bf16 %v842_v28, %v841_v27  ;;  %v1395_v32 = vpop.f32.mrb[44].mxu1 }
 0x26f   :  { %1210 = vst [vmem:[#allocation9 + $0x68] sm:$0xff] %v1186_v30   ;;  %v811_v34 = vadd.f32 %v1395_v32, %v1653_v4  ;;  %v802_v36 = vpop.f32.mrb[45].mxu1 }
 0x270   :  { %1209 = vst [vmem:[#allocation9 + $0x60] sm:$0xff] %v1181_v31   ;;  %v803_v37 = vadd.f32 %v1653_v4, %v802_v36  ;;  %v1396_v38 = vpop.f32.mrb[46].mxu1 }
 0x271   :  { %v814_v39 = vadd.f32 %v1396_v38, %v1653_v4  ;;  %v805_v40 = vpop.f32.mrb[47].mxu1  ;;  %v847_v42 = vmax.f32 %v811_v34, 0.0 }
 0x272   :  { %v806_v41 = vadd.f32 %v1653_v4, %v805_v40  ;;  %v845_v45 = vmax.f32 %v803_v37, 0.0 }
 0x273   :  { %v848_v44 = vmax.f32 %v814_v39, 0.0 }
 0x274   :  { %v846_v46 = vmax.f32 %v806_v41, 0.0 }
 0x275   :  { %v1196_v48 = vpack.c.bf16 %v848_v44, %v847_v42 }
 0x276   :  { %v1191_v50 = vpack.c.bf16 %v846_v46, %v845_v45 }
 0x277   :  { %1212 = vst [vmem:[#allocation9 + $0x78] sm:$0xff] %v1196_v48  }
 0x278   :  { %1211 = vst [vmem:[#allocation9 + $0x70] sm:$0xff] %v1191_v50  }
 0x279   :  { %1522 = shalt.err (!%p1519_p0)
}
 0x27a   :  { %s1523_s8 = scalar_lea.hbm %s1706_s4, 2048 }
 0x27b   :  { %p1524_p1 = scmp.ne.s32.totalorder %s1706_s4, %s1523_s8  ;;  %p1527_p2 = scmp.lt.u32.totalorder %s1523_s8, %s1706_s4 }
 0x27d   :  { %p1529_p3 = pnand %p1527_p2, %p1524_p1 }
 0x27f   :  { %1532 = shalt.err (!%p1529_p3)
}
 0x280   :  { %1020 = dma.vmem_to_hbm [thread:$0]  %s1015_s30, 2048, %s1706_s4, [#allocation5], %s1540_s25, %s1540_s25, %s1541_s26  }
 0x281   :  { %1537 = dma.done.wait [#allocation5], 2048  }
 0x282   :  { %1538 = vsyncadd [#allocation5], 4294965248 }
 0x283   :  { %1024 = vsyncpa [#allocation4], 1 }
 0x284   :  { %1025 = vsyncpa [#allocation7], 1 }
 0x285   :  { %1026 = vsyncpa [#allocation5], 1 }

</bundles_post_ra>
